<compile_context>
chip_gen: v6e
topology: v6e:2x2x1
jax: 0.10.0
libtpu: 0.0.40
codegen_flags: <defaults>
</compile_context>

<pallas_src>
import functools

import jax
import jax.numpy as jnp
from jax.experimental import pallas as pl
from jax.experimental.pallas import tpu as pltpu


# ----------------------------------------------------------------------------
# helpers
# ----------------------------------------------------------------------------

def _round_up(x, m):
    return ((x + m - 1) // m) * m


@functools.lru_cache(maxsize=1)
def _vmem_budget_bytes():
    """Per-TensorCore VMEM budget (clamped; conservative on v7x)."""
    kind = ""
    try:
        kind = jax.devices()[0].device_kind.lower()
    except Exception:
        pass
    # v7x: 64 MiB / TensorCore (even if a capacity query reports per-chip,
    # i.e. 2-TC, numbers).  v5e / v6e: 128 MiB.
    ceiling = (64 << 20) if "v7" in kind else (128 << 20)
    cap = 0
    try:
        cap = int(pltpu.get_tpu_info().vmem_capacity_bytes)
    except Exception:
        cap = 0
    if cap <= 0:
        cap = ceiling
    return max(16 << 20, min(cap, ceiling))


def _softmax_of_rowmax_minus(aff):
    """softmax(rowmax(aff) - aff, axis=-1), via the shift-invariant form.

    softmax is shift-invariant per row, so
        softmax(rowmax - aff) == exp(rowmin - aff) / sum(exp(rowmin - aff)),
    which needs a single cross-lane reduction and keeps every exponent <= 0
    (no overflow).  Exact divide to match the PyTorch reference numerics.
    """
    row_min = jnp.min(aff, axis=-1, keepdims=True)
    e = jnp.exp(row_min - aff)
    return e / jnp.sum(e, axis=-1, keepdims=True)


# ----------------------------------------------------------------------------
# fused path: full (C, N) slab per batch element, single HBM pass over x
# ----------------------------------------------------------------------------

def _cab_fused_kernel(gamma_ref, x_ref, o_ref, *, compute_dtype):
    # gamma_ref: SMEM (1,) f32 (scalar prefetch); x_ref / o_ref: (C, N) VMEM.
    x = x_ref[...]                                            # (C, N)
    xm = x.astype(compute_dtype)

    # affinity = X @ X^T: contraction on the minor (lane) dim of BOTH operands
    # -> no (N, C) transpose is materialized, the MXU is fed directly.
    aff = jax.lax.dot_general(
        xm, xm, dimension_numbers=(((1,), (1,)), ((), ())),
        preferred_element_type=jnp.float32)                   # (C, C) f32

    attn = _softmax_of_rowmax_minus(aff)                      # (C, C) f32

    w = jax.lax.dot_general(
        attn.astype(compute_dtype), xm,
        dimension_numbers=(((1,), (0,)), ((), ())),
        preferred_element_type=jnp.float32)                   # (C, N) f32

    gamma = gamma_ref[0]
    o_ref[...] = (gamma * w + x.astype(jnp.float32)).astype(o_ref.dtype)


def _channel_attention_fused(x_flat, gamma, *, compute_dtype, vmem_limit):
    B, C, N = x_flat.shape
    isz = jnp.dtype(x_flat.dtype).itemsize
    cost = pl.CostEstimate(
        flops=int(4 * B * C * C * N),
        transcendentals=int(B * C * C),
        bytes_accessed=int(2 * B * C * N * isz + 4))
    grid_spec = pltpu.PrefetchScalarGridSpec(
        num_scalar_prefetch=1,                       # gamma -> SMEM
        grid=(B,),
        in_specs=[pl.BlockSpec((None, C, N), lambda b, gamma: (b, 0, 0))],
        out_specs=pl.BlockSpec((None, C, N), lambda b, gamma: (b, 0, 0)),
    )
    return pl.pallas_call(
        functools.partial(_cab_fused_kernel, compute_dtype=compute_dtype),
        out_shape=jax.ShapeDtypeStruct((B, C, N), x_flat.dtype),
        grid_spec=grid_spec,
        compiler_params=pltpu.CompilerParams(
            dimension_semantics=("parallel",),
            vmem_limit_bytes=int(vmem_limit)),
        cost_estimate=cost,
    )(gamma, x_flat)


# ----------------------------------------------------------------------------
# tiled path: stream (C, tn) spatial tiles, keep only the (C, C) affinity
# ----------------------------------------------------------------------------

def _cab_affinity_kernel(x_ref, attn_ref, *, compute_dtype, n_total):
    # grid = (B, n_tiles); n (the spatial reduction) is innermost + "arbitrary"
    # so the f32 (C, C) output block stays VMEM-resident and doubles as the
    # accumulator (no scratch).  Do not reorder the grid axes.
    n = pl.program_id(1)
    tn = x_ref.shape[-1]

    @pl.when(n == 0)
    def _():
        attn_ref[...] = jnp.zeros_like(attn_ref)

    xm = x_ref[...].astype(compute_dtype)                     # (C, tn)
    if n_total % tn:
        # Ragged last tile: zero out-of-range spatial columns in-kernel
        # (instead of padding/slicing the tensor in HBM outside the kernel).
        col = jax.lax.broadcasted_iota(jnp.int32, xm.shape, 1)
        xm = jnp.where(n * tn + col < n_total, xm, jnp.zeros_like(xm))

    attn_ref[...] += jax.lax.dot_general(
        xm, xm, dimension_numbers=(((1,), (1,)), ((), ())),
        preferred_element_type=jnp.float32)                   # partial X X^T

    @pl.when(n == pl.num_programs(1) - 1)
    def _():
        attn_ref[...] = _softmax_of_rowmax_minus(attn_ref[...])


def _cab_apply_kernel(gamma_ref, attn_ref, x_ref, o_ref, *, compute_dtype):
    # grid = (B, n_tiles); every (b, n) tile is independent -> both axes
    # "parallel" (keeps both v7x TensorCores busy for any B).
    x = x_ref[...]                                            # (C, tn)
    w = jax.lax.dot_general(
        attn_ref[...].astype(compute_dtype), x.astype(compute_dtype),
        dimension_numbers=(((1,), (0,)), ((), ())),
        preferred_element_type=jnp.float32)                   # (C, tn)
    o_ref[...] = (gamma_ref[0] * w + x.astype(jnp.float32)).astype(o_ref.dtype)
    # A ragged last tile needs no mask here: garbage spatial columns only feed
    # the same (discarded) out-of-range output columns.


def _channel_attention_tiled(x_flat, gamma, *, tn, compute_dtype, vmem_limit):
    B, C, N = x_flat.shape
    isz = jnp.dtype(x_flat.dtype).itemsize
    n_tiles = pl.cdiv(N, tn)

    # Pass 1: affinity + softmax, x streamed once.
    attn = pl.pallas_call(
        functools.partial(_cab_affinity_kernel, compute_dtype=compute_dtype,
                          n_total=N),
        out_shape=jax.ShapeDtypeStruct((B, C, C), jnp.float32),
        grid=(B, n_tiles),
        in_specs=[pl.BlockSpec((None, C, tn), lambda b, n: (b, 0, n))],
        out_specs=pl.BlockSpec((None, C, C), lambda b, n: (b, 0, 0)),
        compiler_params=pltpu.CompilerParams(
            dimension_semantics=("parallel", "arbitrary"),
            vmem_limit_bytes=int(vmem_limit)),
        cost_estimate=pl.CostEstimate(
            flops=int(2 * B * C * C * N),
            transcendentals=int(B * C * C),
            bytes_accessed=int(B * C * N * isz + B * C * C * 4)),
    )(x_flat)

    # Pass 2: out = gamma * (attn @ x) + x, x streamed a second time.
    grid_spec = pltpu.PrefetchScalarGridSpec(
        num_scalar_prefetch=1,                       # gamma -> SMEM
        grid=(B, n_tiles),
        in_specs=[
            pl.BlockSpec((None, C, C), lambda b, n, gamma: (b, 0, 0)),
            pl.BlockSpec((None, C, tn), lambda b, n, gamma: (b, 0, n)),
        ],
        out_specs=pl.BlockSpec((None, C, tn), lambda b, n, gamma: (b, 0, n)),
    )
    return pl.pallas_call(
        functools.partial(_cab_apply_kernel, compute_dtype=compute_dtype),
        out_shape=jax.ShapeDtypeStruct((B, C, N), x_flat.dtype),
        grid_spec=grid_spec,
        compiler_params=pltpu.CompilerParams(
            dimension_semantics=("parallel", "parallel"),
            vmem_limit_bytes=int(vmem_limit)),
        cost_estimate=pl.CostEstimate(
            flops=int(2 * B * C * C * N),
            transcendentals=0,
            bytes_accessed=int(2 * B * C * N * isz + B * C * C * 4 + 4)),
    )(gamma, attn, x_flat)


# ----------------------------------------------------------------------------
# public wrapper
# ----------------------------------------------------------------------------

def channel_attention_block(x, gamma, *, compute_dtype=jnp.float32,
                            spatial_tile=None):
    """Forward pass of ChannelAttentionBlock.

    x: (B, C, H, W);  gamma: (1,) learned scalar (nn.Parameter(torch.zeros(1))).
    compute_dtype: dtype of the MXU operands (accumulation is always f32);
        bf16 is the fast path on v5e/v6e/v7x, f32 (default) matches PyTorch.
    spatial_tile: force the two-pass tiled path with this tile width (rounded
        up to a multiple of 128); None = automatic.
    """
    B, C, H, W = x.shape
    N = H * W
    x_flat = x.reshape(B, C, N)
    gamma = jnp.asarray(gamma, jnp.float32).reshape(1)

    isz = jnp.dtype(x.dtype).itemsize
    csz = jnp.dtype(compute_dtype).itemsize
    budget = _vmem_budget_bytes()

    # Fused-path VMEM need (conservative): double-buffered (C, N) in/out slabs
    # in the input dtype + compute/f32 working slabs + small (C, C) pieces.
    fused_need = C * N * (4 * isz + csz + 8) + 4 * C * C * 4
    # Fused reads x from HBM once vs. twice for tiled -> bias fused-first,
    # especially on 128 MiB parts (v5e / v6e).
    fused_gate = 0.8 if budget >= (96 << 20) else 0.7

    force_tiled = spatial_tile is not None
    use_fused = (N < 128) or (
        not force_tiled and fused_need <= fused_gate * budget)

    if use_fused:
        vmem_limit = int(min(0.95 * budget, max(32 << 20, 1.3 * fused_need)))
        out_flat = _channel_attention_fused(
            x_flat, gamma, compute_dtype=compute_dtype, vmem_limit=vmem_limit)
    else:
        n_cap = _round_up(N, 128)
        if force_tiled:
            tn = min(max(128, _round_up(spatial_tile, 128)), n_cap)
        else:
            # Grow the spatial tile under a bytes-per-step budget (no hard
            # element cap): amortizes the ~0.35us/step overhead and keeps the
            # strided (B, C, N) last-dim DMAs long.
            per_col = C * (4 * isz + 2 * csz + 8)
            target = min(budget // 6,
                         (4 << 20) if budget <= (64 << 20) else (8 << 20))
            tn = 128
            while tn < n_cap and 2 * tn * per_col <= target:
                tn *= 2
            tn = min(tn, n_cap)
        per_step = 2 * C * tn * (2 * isz + csz + 4) + 2 * C * C * (4 + csz)
        vmem_limit = int(min(0.95 * budget,
                             max(32 << 20, per_step + (8 << 20))))
        out_flat = _channel_attention_tiled(
            x_flat, gamma, tn=tn, compute_dtype=compute_dtype,
            vmem_limit=vmem_limit)

    return out_flat.reshape(B, C, H, W)


# ----------------------------------------------------------------------------
# pure-JAX reference + self-test
# ----------------------------------------------------------------------------

def _reference(x, gamma, compute_dtype=jnp.float32):
    B, C, H, W = x.shape
    q = x.reshape(B, C, -1).astype(compute_dtype)
    k = jnp.transpose(q, (0, 2, 1))
    aff = jnp.matmul(q, k, preferred_element_type=jnp.float32,
                     precision=jax.lax.Precision.HIGHEST)
    aff_new = jnp.max(aff, axis=-1, keepdims=True) - aff
    aff_new = jax.nn.softmax(aff_new, axis=-1)
    w = jnp.matmul(aff_new.astype(compute_dtype), q,
                   preferred_element_type=jnp.float32,
                   precision=jax.lax.Precision.HIGHEST).reshape(B, C, H, W)
    return gamma[0] * w + x.astype(jnp.float32)


if __name__ == "__main__":
    key = jax.random.PRNGKey(0)
    B, C, H, W = 2, 4, 16, 16
    x = jax.random.normal(key, (B, C, H, W), dtype=jnp.float32)

    gamma_zero = jnp.zeros((1,), jnp.float32)     # nn.Parameter(torch.zeros(1))
    gamma_test = jnp.array([0.5], jnp.float32)    # exercise the attention path

    ref0 = _reference(x, gamma_zero)
    ref1 = _reference(x, gamma_test)

    # Fused (single-slab) path, f32 compute — auto-selected for this shape.
    out0 = jax.block_until_ready(channel_attention_block(x, gamma_zero))
    out1 = jax.block_until_ready(channel_attention_block(x, gamma_test))
    assert jnp.allclose(out0, ref0, atol=2e-3, rtol=2e-3), "fused gamma=0"
    assert jnp.allclose(out1, ref1, atol=2e-3, rtol=2e-3), "fused gamma=0.5"

    # Two-pass tiled path (forced), f32 compute.
    out2 = jax.block_until_ready(
        channel_attention_block(x, gamma_test, spatial_tile=128))
    assert jnp.allclose(out2, ref1, atol=2e-3, rtol=2e-3), "tiled"

    # Tiled path with a ragged spatial size (exercises the in-kernel mask).
    x_odd = jax.random.normal(jax.random.PRNGKey(1), (B, C, 15, 15),
                              dtype=jnp.float32)
    ref3 = _reference(x_odd, gamma_test)
    out3 = jax.block_until_ready(
        channel_attention_block(x_odd, gamma_test, spatial_tile=128))
    assert jnp.allclose(out3, ref3, atol=2e-3, rtol=2e-3), "tiled ragged"

    # bf16 MXU operands (f32 accumulation) vs. a matched bf16-operand reference.
    ref_bf = _reference(x, gamma_test, compute_dtype=jnp.bfloat16)
    out_bf = jax.block_until_ready(
        channel_attention_block(x, gamma_test, compute_dtype=jnp.bfloat16))
    assert jnp.allclose(out_bf, ref_bf, atol=5e-2, rtol=5e-2), "fused bf16"

    print("KERNEL_OK")
</pallas_src>

<mosaic_0001>
module attributes {stable_mosaic.version = 11 : i64} {
  func.func @_cab_fused_kernel(%arg0: i32, %arg1: memref<1xf32, #tpu.memory_space<smem>>, %arg2: memref<1x4x256xf32, #tpu.memory_space<vmem>>, %arg3: memref<1x4x256xf32, #tpu.memory_space<vmem>>) attributes {dimension_semantics = [#tpu.dimension_semantics<parallel>], iteration_bounds = array<i64: 2>, scalar_prefetch = 1 : i64, scratch_operands = 0 : i64, tpu.core_type = #tpu.core_type<tc>, window_params = [{transform_indices = @transform_0, window_bounds = array<i64: 1, 4, 256>}, {transform_indices = @transform_1, window_bounds = array<i64: 1, 4, 256>}]} {
    %c0 = arith.constant 0 : index
    %c0_0 = arith.constant 0 : index
    %c0_1 = arith.constant 0 : index
    %0 = vector.load %arg2[%c0, %c0_0, %c0_1] : memref<1x4x256xf32, #tpu.memory_space<vmem>>, vector<1x4x256xf32>
    %1 = vector.shape_cast %0 : vector<1x4x256xf32> to vector<4x256xf32>
    %cst = arith.constant dense<0.000000e+00> : vector<4x4xf32>
    %2 = tpu.matmul %1, %1, %cst {dimension_numbers = #tpu.dot_dimension_numbers<[1], [1], [0], [0], [0, 0, 1, 0], [], []>} : vector<4x256xf32>, vector<4x256xf32>, vector<4x4xf32> -> vector<4x4xf32>
    %cst_2 = arith.constant dense<0x7F800000> : vector<4xf32>
    %3 = vector.multi_reduction <minimumf>, %2, %cst_2 [1] : vector<4x4xf32> to vector<4xf32>
    %4 = vector.shape_cast %3 : vector<4xf32> to vector<4x1xf32>
    %5 = vector.broadcast %4 : vector<4x1xf32> to vector<4x4xf32>
    %6 = arith.subf %5, %2 : vector<4x4xf32>
    %7 = math.exp %6 : vector<4x4xf32>
    %cst_3 = arith.constant dense<0.000000e+00> : vector<4xf32>
    %8 = vector.multi_reduction <add>, %7, %cst_3 [1] : vector<4x4xf32> to vector<4xf32>
    %9 = vector.shape_cast %8 : vector<4xf32> to vector<4x1xf32>
    %10 = vector.broadcast %9 : vector<4x1xf32> to vector<4x4xf32>
    %11 = arith.divf %7, %10 : vector<4x4xf32>
    %cst_4 = arith.constant dense<0.000000e+00> : vector<4x256xf32>
    %12 = tpu.matmul %11, %1, %cst_4 {dimension_numbers = #tpu.dot_dimension_numbers<[1], [0], [0], [1], [0, 0, 1, 1], [], []>} : vector<4x4xf32>, vector<4x256xf32>, vector<4x256xf32> -> vector<4x256xf32>
    %c0_5 = arith.constant 0 : index
    %13 = memref.load %arg1[%c0_5] : memref<1xf32, #tpu.memory_space<smem>>
    %14 = vector.broadcast %13 : f32 to vector<4x256xf32>
    %15 = arith.mulf %14, %12 : vector<4x256xf32>
    %16 = arith.addf %15, %1 : vector<4x256xf32>
    %c0_6 = arith.constant 0 : index
    %c0_7 = arith.constant 0 : index
    %c0_8 = arith.constant 0 : index
    %17 = vector.load %arg3[%c0_6, %c0_7, %c0_8] : memref<1x4x256xf32, #tpu.memory_space<vmem>>, vector<1x4x256xf32>
    %18 = vector.shape_cast %17 : vector<1x4x256xf32> to vector<4x256xf32>
    %19 = vector.shape_cast %16 : vector<4x256xf32> to vector<1x4x256xf32>
    tpu.vector_store %arg3[%c0_6, %c0_7, %c0_8], %19 {strides = array<i32>} : memref<1x4x256xf32, #tpu.memory_space<vmem>>, vector<1x4x256xf32>,
    return
  }
  func.func @transform_0(%arg0: i32, %arg1: memref<1xf32, #tpu.memory_space<smem>>) -> (i32, i32, i32) {
    %c0_i32 = arith.constant 0 : i32
    %c0_i32_0 = arith.constant 0 : i32
    %c0_i32_1 = arith.constant 0 : i32
    return %arg0, %c0_i32, %c0_i32_0 : i32, i32, i32
  }
  func.func @transform_1(%arg0: i32, %arg1: memref<1xf32, #tpu.memory_space<smem>>) -> (i32, i32, i32) {
    %c0_i32 = arith.constant 0 : i32
    %c0_i32_0 = arith.constant 0 : i32
    %c0_i32_1 = arith.constant 0 : i32
    return %arg0, %c0_i32, %c0_i32_0 : i32, i32, i32
  }
}

</mosaic_0001>

<bundles_post_ra>
// kernel: tpu_custom_call.1
= control target key start
LH: loop header
LB: loop body
LE: loop exit
PB: predicated region body
PF: predicated region fallthrough
CT: control target
= control target key end

     0   :  { %s728_s0 = inlined_call_operand.<no memory space> [shape: f32[1], index: 0, kind: input, shape index: {}]   ;;  %s729_s1 = inlined_call_operand.hbm [shape: f32[2,4,256], index: 1, kind: input, shape index: {}]   ;;  %s730_s2 = inlined_call_operand.hbm [shape: f32[2,4,256], index: 2, kind: output, shape index: {}]  }
   0x1   :  { %7 = sst [smem:[#allocation3]] %s728_s0 }
   0x2   :  { %8 = vsyncpa [#allocation5], 0 }
   0x3   :  { %10 = vsyncpa [#allocation5 + $0x1], 0 }
   0x4   :  { %11 = vsyncpa [#allocation6], 0 }
   0x5   :  { %13 = vsyncpa [#allocation6 + $0x1], 0  ;;  %s583_s11 = smov 0   ;;  %s585_s12 = smov 0  }
   0x6   :  { %s587_s13 = smov 0   ;;  %s589_s14 = smov 0  }
   0x7 LB: > { %s604_s0 = sadd.s32 4294967295, %s560_s14   ;;  %s397_s15 = sadd.s32 4294967294, %s560_s14   ;;  %s560_s14 = sphi %s589_s14, %s747_s14   ;;  %s556_s13 = sphi %s587_s13, %s746_s13   ;;  %s552_s12 = sphi %s585_s12, %s745_s12   ;;  %s548_s11 = sphi %s583_s11, %s744_s11  }
   0x8   : > { %s608_s16 = sadd.s32 1, %s560_s14   ;;  %s26_s17 = sadd.s32 1, %s556_s13 }
   0x9   : > { %s23_s18 = ssub.s32 %s560_s14, %s608_s16  ;;  %p33_p0 = scmp.ne.s32.totalorder %s556_s13, %s552_s12 }
   0xa   : > { %p24_p1 = scmp.eq.s32.totalorder %s23_s18, 0  ;;  %p34_p2 = scmp.eq.s32.totalorder %s560_s14, 0 }
   0xb   : > { %p39_p3 = scmp.ne.s32.totalorder %s552_s12, %s548_s11  ;;  %p40_p4 = scmp.eq.s32.totalorder %s604_s0, 0 }
   0xc   : > { %s620_s19 = scalar_select %p24_p1, %s556_s13, %s26_s17  }
   0xd   : > { %p622_p5 = por %p34_p2, %p33_p0  ;;  %p626_p6 = por %p40_p4, %p39_p3 }
   0xe   : > { %p63_p7 = scmp.eq.s32.totalorder %s604_s0, 1  ;;  %p69_p8 = scmp.eq.s32.totalorder %s397_s15, 1 }
   0xf   : > { %s734_s21 = scalar_select %p626_p6, 1, 0 }
  0x10   : > { %p428_p10 = scmp.lt.s32.totalorder %s560_s14, 2  ;;  %p633_p11 = por %p63_p7, %p33_p0 }
  0x11   : > { %p637_p12 = por %p69_p8, %p39_p3  ;;  %s89_s24 = sand.u32 1, %s556_s13  }
  0x12   : > { %s735_s22 = scalar_select %p633_p11, 1, 0 }
  0x13   : > { %s736_s23 = scalar_select %p637_p12, 1, 0 }
  0x14   : > { %s414_s25 = sshll.u32 %s560_s14, 7  ;;  %s400_s26 = sshll.u32 %s89_s24, 3 }
  0x15   : > { %s646_s29 = scalar_lea.hbm %s729_s1, %s414_s25  ;;  %s93_s30 = scalar_lea.vmem [#allocation4], %s400_s26 }
  0x16   : > { %s101_s3 = sshll.u32 %s93_s30, 4  ;;  %p650_p13 = pnand %p428_p10, %p622_p5  ;;  %s654_s3 = int_to_ptr.vmem [resolvable:$true] %s101_s3 }
  0x17   : > { %s90_s5 = scalar_lea.sflag [#allocation5], %s89_s24  ;;  %s468_s6 = scalar_lea.hbm %s646_s29, 128 }
  0x18   : > { %p469_p2 = scmp.ne.s32.totalorder %s646_s29, %s468_s6  ;;  %p470_p3 = pneg %p650_p13 }
  0x19   : > { %s473_s9 = scalar_lea.hbm %s729_s1, 256  ;;  %p474_p5 = scmp.lt.s32.totalorder %s646_s29, %s729_s1 }
  0x1a   : > { %p471_p4 = pnand %p470_p3, %p469_p2  ;;  %p475_p8 = scmp.lt.s32.totalorder %s473_s9, %s468_s6 }
  0x1c   : > { %p472_p7 = pneg %p471_p4  ;;  %p476_p10 = por %p475_p8, %p474_p5 }
  0x1e   : > { %p477_p9 = pnand %p476_p10, %p472_p7 }
  0x20   : > { %480 = shalt.err (!%p477_p9)
}
  0x21   : > { %s481_s17 = scalar_lea.vmem %s654_s3, 128  ;;  %s562_s18 = smov [#allocation4]  }
  0x22   : > { %p482_p0 = scmp.ne.s32.totalorder %s654_s3, %s481_s17  ;;  %s486_s20 = sshll.u32 %s562_s18, 4  ;;  %s487_s20 = int_to_ptr.vmem [resolvable:$false] %s486_s20 }
  0x23   : > { %s488_s24 = scalar_lea.vmem %s487_s20, 256  ;;  %p489_p4 = scmp.lt.s32.totalorder %s654_s3, %s487_s20 }
  0x24   : > { %p484_p1 = pnand %p482_p0, %p470_p3  ;;  %p490_p12 = scmp.lt.s32.totalorder %s488_s24, %s481_s17 }
  0x26   : > { %p485_p2 = pneg %p484_p1  ;;  %p491_p11 = por %p490_p12, %p489_p4 }
  0x28   : > { %p492_p6 = pnand %p491_p11, %p485_p2 }
  0x2a   : > { %495 = shalt.err (!%p492_p6)
}
  0x2b   : > { %423 = dma.hbm_to_vmem [thread:$0]  (!%p650_p13), %s646_s29, 128, %s654_s3, %s90_s5  }
  0x2c   : > { %p738_p9 = scmp.lt.s32.totalorder %s560_s14, 3  ;;  %p739_p7 = scmp.ge.s32.totalorder %s560_s14, 1 }
  0x2e   : > { %p107_p0 = pnand %p739_p7, %p738_p9 }
  0x2f   : > { %s681_s25 = sand.u32 (!%p107_p0), 1, %s552_s12   ;;  %p740_p6 = scmp.ne.s32.totalorder (!%p107_p0), %s734_s21, 0 }
  0x30   : > { %110 = sbr.rel (%p107_p0) target bundleno = 780 (0x30c), region = 24  ;;  %s404_s26 = sshll.u32 (!%p107_p0), %s681_s25, 3 }
  0x31   : > { %s113_s27 = scalar_lea.sflag (!%p107_p0), [#allocation5], %s681_s25  ;;  %s116_s28 = scalar_lea.vmem (!%p107_p0), [#allocation4], %s404_s26 }
  0x35   : > { %539 = dma.done.wait (%p740_p6), %s113_s27, 128  }
  0x36   : > { %541 = vsyncadd (%p740_p6), %s113_s27, 4294967168  ;;  %v135_v0 = vld [vmem:[%s116_s28] sm:$0xff]  ;;  %vm209_vm0 = vcmask 27648   ;;  %vm225_vm1 = vcmask 1043456   ;;  %v563_v10 = vmov 0.0   ;;  %vm221_vm2 = vcmask 31744  }
  0x37   : > { %v137_v1 = vcombine.high %v135_v0, %v135_v0  ;;  %294 = vmatprep.mubr.f32.mxu1 %v563_v10  ;;  %s301_s21 = sld [smem:[#allocation3]]  ;;  %s415_s29 = sshll.u32 %s604_s0, 7 }
  0x38   : > { %s134_s30 = scalar_lea.vmem [#allocation7], %s404_s26  ;;  %s325_s6 = scalar_lea.hbm %s730_s2, %s415_s29 }
  0x39   : > { %169 = vmatprep.subr.mxu0 %v137_v1  ;;  %203 = vmatprep.mubr.f32.mxu0 %v137_v1  ;;  %s327_s3 = sshll.u32 %s134_s30, 4  ;;  %s313_s7 = scalar_lea.sflag [#allocation6], %s681_s25  ;;  %s328_s3 = int_to_ptr.vmem [resolvable:$true] %s327_s3 }
  0x3a   : > { %170 = vmatpush1.xpose.msra.mxu0 %v135_v0  ;;  %406 = vmatprep.subr.msk.mxu1 %vm225_vm1, %v137_v1  ;;  %s496_s8 = scalar_lea.vmem %s328_s3, 128  ;;  %p741_p12 = scmp.ne.s32.totalorder %s735_s22, 0 }
  0x3b   : > { %407 = vmatpush1.msk.msra.mxu1 %vm225_vm1, %v135_v0  ;;  %p497_p11 = scmp.ne.s32.totalorder %s328_s3, %s496_s8  ;;  %s564_s9 = smov [#allocation7]  }
  0x3c   : > { %s500_s0 = sshll.u32 %s564_s9, 4  ;;  %s501_s0 = int_to_ptr.vmem [resolvable:$false] %s500_s0 }
  0x3d   : > { %204 = vmatmul.mubr.f32.vlgmr.msra.gmra.mxu0 %v135_v0  ;;  %v302_v14 = vstv %s301_s21  ;;  %p498_p13 = pnand %p497_p11, %p741_p12  ;;  %s502_s10 = scalar_lea.vmem %s501_s0, 256 }
  0x3e   : > { %p503_p3 = scmp.lt.s32.totalorder %s328_s3, %s501_s0  ;;  %p504_p5 = scmp.lt.s32.totalorder %s502_s10, %s496_s8 }
  0x3f   : > { %p499_p1 = pneg %p498_p13 }
  0x40   : > { %p505_p8 = por %p504_p5, %p503_p3 }
  0x42   : > { %p506_p10 = pnand %p505_p8, %p499_p1 }
  0xfd   : > { %v205_v2 = vpop.f32.mrf.mxu0 }
  0xfe   : > { %v210_v3 = vsel %vm209_vm0, %v205_v2, inf }
  0xff   : > { %211 = vmin.xlane.f32.xlu0 %v210_v3  ;;  %v207_v4 = vpop.f32.mrf.mxu0 }
 0x188   : > { %v212_v5 = vpop.xlane.xlu0 %211 }
 0x189   : > { %v213_v6 = vsub.f32 %v212_v5, %v205_v2 }
 0x18b   : > { %v214_v7 = vmul.f32 1.442695, %v213_v6 }
 0x18d   : > { %464 = vpow2.f32 %v214_v7 }
 0x19a   : > { %v465_v8 = vpop.eup %464 }
 0x19b   : > { %v216_v9 = vsel %vm209_vm0, %v465_v8, 0.0 }
 0x19c   : > { %217 = vadd.xlane.f32.xlu0 %v216_v9 }
 0x225   : > { %v218_v11 = vpop.xlane.xlu0 %217 }
 0x226   : > { %466 = vrcp.f32 %v218_v11 }
 0x233   : > { %v467_v12 = vpop.eup %466 }
 0x234   : > { %v220_v13 = vmul.f32 %v467_v12, %v465_v8 }
 0x236   : > { %408 = vmatmul.mubr.msk.f32.vlgmr.msra.gmra.mxu1 %vm221_vm2, %v220_v13 }
 0x2f6   : > { %v296_v15 = vpop.f32.mrf.mxu1 }
 0x2f7   : > { %v303_v16 = vmul.f32 %v302_v14, %v296_v15 }
 0x2f8   : > { %v298_v17 = vpop.f32.mrf.mxu1 }
 0x2f9   : > { %v304_v18 = vmul.f32 %v302_v14, %v298_v17  ;;  %v305_v19 = vadd.f32 %v303_v16, %v135_v0 }
 0x2fb   : > { %v306_v20 = vadd.f32 %v304_v18, %v137_v1 }
 0x2fd   : > { %v309_v21 = vcombine.low %v305_v19, %v306_v20 }
 0x2ff   : > { %311 = vst [vmem:[%s134_s30] sm:$0xff] %v309_v21 }
 0x300   : > { %509 = shalt.err (!%p506_p10)
}
 0x301   : > { %s510_s15 = scalar_lea.hbm %s325_s6, 128  ;;  %s514_s20 = scalar_lea.hbm %s730_s2, 256 }
 0x302   : > { %p511_p2 = scmp.ne.s32.totalorder %s325_s6, %s510_s15  ;;  %p515_p7 = scmp.lt.s32.totalorder %s325_s6, %s730_s2 }
 0x303   : > { %p516_p0 = scmp.lt.s32.totalorder %s514_s20, %s510_s15 }
 0x304   : > { %p512_p4 = pnand %p511_p2, %p741_p12 }
 0x305   : > { %p517_p6 = por %p516_p0, %p515_p7 }
 0x306   : > { %p513_p9 = pneg %p512_p4 }
 0x308   : > { %p518_p11 = pnand %p517_p6, %p513_p9 }
 0x30a   : > { %521 = shalt.err (!%p518_p11)
}
 0x30b   : > { %418 = dma.vmem_to_hbm [thread:$0]  (%p741_p12), %s328_s3, 128, %s325_s6, %s313_s7  }
 0x30c PF: > { %s339_s26 = sand.u32 1, %s548_s11   ;;  %p742_p13 = scmp.ne.s32.totalorder %s736_s23, 0 }
 0x30d   : > { %p743_p1 = scmp.ge.s32.totalorder %s560_s14, 2  ;;  %s340_s27 = scalar_lea.sflag [#allocation6], %s339_s26 }
 0x30f   : > { %p425_p3 = pnand %p743_p1, %p742_p13 }
 0x311   : > { %p426_p5 = pneg %p425_p3 }
 0x313   : > { %543 = dma.done.wait (%p426_p5), %s340_s27, 128  }
 0x314   : > { %545 = vsyncadd (%p426_p5), %s340_s27, 4294967168  ;;  %p16_p8 = scmp.ge.s32.totalorder %s608_s16, 4   ;;  %s744_s11 = smov %s552_s12 }
 0x315   : > { %s745_s12 = smov %s556_s13  ;;  %s746_s13 = smov %s620_s19 }
 0x316   : > { %s747_s14 = smov %s608_s16  ;;  %18 = sbr.rel (!%p16_p8) target bundleno = 7 (0x7), region = 69 }
 0x31b   :  { %345 = vsyncpa [#allocation5], 1 }
 0x31c   :  { %347 = vsyncpa [#allocation5 + $0x1], 1 }
 0x31d   :  { %348 = vsyncpa [#allocation6], 1 }
 0x31e   :  { %350 = vsyncpa [#allocation6 + $0x1], 1 }

</bundles_post_ra>
